<compile_context>
chip_gen: v7x
topology: tpu7x:2x2x1
jax: 0.10.0
libtpu: 0.0.40
codegen_flags: <defaults>
</compile_context>

<pallas_src>
import jax
import jax.numpy as jnp
import numpy as np
from jax.experimental import pallas as pl
from jax.experimental.pallas import tpu as pltpu

_LN_EPS = 1e-5
_INV_SQRT2 = 0.7071067811865476


def _gelu(x):
    # exact (erf-based) GELU, matching torch.nn.GELU() default
    return 0.5 * x * (1.0 + jax.lax.erf(x * _INV_SQRT2))


# ----------------------------- fused Pallas kernel -------------------------- #

def _multipool_kernel(x_ref, brow_ref, bcol_ref, w_ref, b_ref, g_ref, be_ref,
                      o_ref, sum_acc, max_acc, cnt_acc):
    """Streams one [TN,H] node tile per grid step; finalizes on the last step."""
    t = pl.program_id(0)
    nt = pl.num_programs(0)
    B, H = sum_acc.shape
    neg = jnp.finfo(jnp.float32).min

    @pl.when(t == 0)
    def _init():
        sum_acc[...] = jnp.zeros_like(sum_acc)
        cnt_acc[...] = jnp.zeros_like(cnt_acc)
        max_acc[...] = jnp.full_like(max_acc, neg)

    x = x_ref[...]                 # [TN, H]
    brow = brow_ref[...]           # [1, TN]  node -> graph id (lane-major)
    bcol = bcol_ref[...]           # [TN, 1]  node -> graph id (sublane-major)

    # --- sum / count pooling on the MXU via one-hot membership matmul -------
    gids = jax.lax.broadcasted_iota(jnp.int32, (B, 1), 0)           # [B, 1]
    onehot = (brow == gids).astype(jnp.float32)                     # [B, TN]
    sum_acc[...] += jnp.dot(onehot, x, preferred_element_type=jnp.float32)
    cnt_acc[...] += jnp.sum(onehot, axis=1, keepdims=True)          # [B, 1]

    # --- max pooling: per-graph masked sublane reduce (VPU/XLU) -------------
    # Statically unrolled over the (small, static) graph count; for very large
    # graph counts this would become a fori_loop with dynamic row updates.
    rows = []
    for gid in range(B):
        m = bcol == gid                                              # [TN, 1]
        rows.append(jnp.max(jnp.where(m, x, neg), axis=0, keepdims=True))
    max_acc[...] = jnp.maximum(max_acc[...], jnp.concatenate(rows, axis=0))

    # --- finalize: projection (concat-free) + LayerNorm + GELU --------------
    @pl.when(t == nt - 1)
    def _finalize():
        cnt = cnt_acc[...]                                           # [B, 1]
        sum_p = sum_acc[...]                                         # [B, H]
        inv = pl.reciprocal(jnp.maximum(cnt, 1.0), approx=True)
        mean_p = sum_p * inv
        max_p = jnp.where(cnt > 0.0, max_acc[...], 0.0)              # empty guard

        # pooled = [mean | max | sum];  pooled @ W == mean@W0 + max@W1 + sum@W2
        y = (jnp.dot(mean_p, w_ref[0:H, :], preferred_element_type=jnp.float32)
             + jnp.dot(max_p, w_ref[H:2 * H, :], preferred_element_type=jnp.float32)
             + jnp.dot(sum_p, w_ref[2 * H:3 * H, :], preferred_element_type=jnp.float32)
             + b_ref[...])

        mu = jnp.mean(y, axis=-1, keepdims=True)
        var = jnp.mean(jnp.square(y - mu), axis=-1, keepdims=True)
        yn = (y - mu) * jax.lax.rsqrt(var + _LN_EPS)
        o_ref[...] = _gelu(yn * g_ref[...] + be_ref[...])


def multi_pooling(x, batch, params, num_graphs, *, node_tile=128):
    """x: [N, H] float32, batch: [N] int graph ids in [0, num_graphs)."""
    N, H = x.shape
    n_tiles = max(1, (N + node_tile - 1) // node_tile)
    Np = n_tiles * node_tile
    pad = Np - N

    xp = jnp.pad(x.astype(jnp.float32), ((0, pad), (0, 0)))
    bp = jnp.pad(batch.astype(jnp.int32), (0, pad), constant_values=-1)
    brow = bp.reshape(1, Np)
    bcol = bp.reshape(Np, 1)

    W = params["W"].astype(jnp.float32)                              # [3H, H]
    b = params["b"].reshape(1, H).astype(jnp.float32)
    g = params["g"].reshape(1, H).astype(jnp.float32)
    be = params["be"].reshape(1, H).astype(jnp.float32)

    const = lambda shape: pl.BlockSpec(shape, lambda t: (0,) * len(shape))

    out = pl.pallas_call(
        _multipool_kernel,
        grid=(n_tiles,),
        in_specs=[
            pl.BlockSpec((node_tile, H), lambda t: (t, 0)),          # x tile
            pl.BlockSpec((1, node_tile), lambda t: (0, t)),          # batch row
            pl.BlockSpec((node_tile, 1), lambda t: (t, 0)),          # batch col
            const((3 * H, H)),                                       # W
            const((1, H)),                                           # bias
            const((1, H)),                                           # LN gamma
            const((1, H)),                                           # LN beta
        ],
        out_specs=pl.BlockSpec((num_graphs, H), lambda t: (0, 0)),
        out_shape=jax.ShapeDtypeStruct((num_graphs, H), jnp.float32),
        scratch_shapes=[
            pltpu.VMEM((num_graphs, H), jnp.float32),                # sum acc
            pltpu.VMEM((num_graphs, H), jnp.float32),                # max acc
            pltpu.VMEM((num_graphs, 1), jnp.float32),                # count acc
        ],
        compiler_params=pltpu.CompilerParams(
            dimension_semantics=("arbitrary",)),                     # reduction axis
    )(xp, brow, bcol, W, b, g, be)
    return out


# ------------------------------ pure-JAX reference --------------------------- #

def multi_pooling_ref(x, batch, params, num_graphs):
    onehot = (batch[None, :] == jnp.arange(num_graphs)[:, None]).astype(jnp.float32)
    cnt = jnp.sum(onehot, axis=1, keepdims=True)
    sum_p = onehot @ x
    mean_p = sum_p / jnp.maximum(cnt, 1.0)
    masked = jnp.where(onehot[:, :, None] > 0, x[None, :, :], -jnp.inf)
    max_p = jnp.where(cnt > 0, jnp.max(masked, axis=1), 0.0)
    pooled = jnp.concatenate([mean_p, max_p, sum_p], axis=1)
    y = pooled @ params["W"] + params["b"][None, :]
    mu = jnp.mean(y, axis=-1, keepdims=True)
    var = jnp.mean(jnp.square(y - mu), axis=-1, keepdims=True)
    yn = (y - mu) / jnp.sqrt(var + _LN_EPS)
    return _gelu(yn * params["g"][None, :] + params["be"][None, :])


# ---------------------------------- main ------------------------------------ #

if __name__ == "__main__":
    H = 128                      # lane-dense hidden dim
    B = 2                        # graphs in the batch
    nodes_per_graph = 8
    N = B * nodes_per_graph

    key = jax.random.PRNGKey(0)
    kx, kw, kb = jax.random.split(key, 3)

    x = jax.random.normal(kx, (N, H), jnp.float32)
    batch = jnp.array([g for g in range(B) for _ in range(nodes_per_graph)],
                      dtype=jnp.int32)

    params = {
        "W": jax.random.normal(kw, (3 * H, H), jnp.float32) / np.sqrt(3 * H),
        "b": 0.01 * jax.random.normal(kb, (H,), jnp.float32),
        "g": jnp.ones((H,), jnp.float32),
        "be": jnp.zeros((H,), jnp.float32),
    }

    out = multi_pooling(x, batch, params, num_graphs=B)
    out = jax.block_until_ready(out)

    assert out.shape == (B, H), out.shape
    assert bool(jnp.all(jnp.isfinite(out)))

    ref = multi_pooling_ref(x, batch, params, num_graphs=B)
    assert bool(jnp.allclose(out, ref, atol=2e-2, rtol=2e-2)), (
        float(jnp.max(jnp.abs(out - ref))))

    print("KERNEL_OK")
</pallas_src>

<mosaic_0001>
module attributes {stable_mosaic.version = 11 : i64} {
  func.func @_multipool_kernel(%arg0: i32, %arg1: memref<128x128xf32, #tpu.memory_space<vmem>>, %arg2: memref<1x128xi32, #tpu.memory_space<vmem>>, %arg3: memref<128x1xi32, #tpu.memory_space<vmem>>, %arg4: memref<384x128xf32, #tpu.memory_space<vmem>>, %arg5: memref<1x128xf32, #tpu.memory_space<vmem>>, %arg6: memref<1x128xf32, #tpu.memory_space<vmem>>, %arg7: memref<1x128xf32, #tpu.memory_space<vmem>>, %arg8: memref<2x128xf32, #tpu.memory_space<vmem>>, %arg9: memref<2x128xf32, #tpu.memory_space<vmem>>, %arg10: memref<2x128xf32, #tpu.memory_space<vmem>>, %arg11: memref<2x1xf32, #tpu.memory_space<vmem>>) attributes {dimension_semantics = [#tpu.dimension_semantics<arbitrary>], iteration_bounds = array<i64: 1>, scalar_prefetch = 0 : i64, scratch_operands = 3 : i64, tpu.core_type = #tpu.core_type<tc>, window_params = [{transform_indices = @transform_0, window_bounds = array<i64: 128, 128>}, {transform_indices = @transform_1, window_bounds = array<i64: 1, 128>}, {transform_indices = @transform_2, window_bounds = array<i64: 128, 1>}, {pipeline_mode = #tpu.pipeline_mode<synchronous>, transform_indices = @transform_3, window_bounds = array<i64: 384, 128>}, {pipeline_mode = #tpu.pipeline_mode<synchronous>, transform_indices = @transform_4, window_bounds = array<i64: 1, 128>}, {pipeline_mode = #tpu.pipeline_mode<synchronous>, transform_indices = @transform_5, window_bounds = array<i64: 1, 128>}, {pipeline_mode = #tpu.pipeline_mode<synchronous>, transform_indices = @transform_6, window_bounds = array<i64: 1, 128>}, {pipeline_mode = #tpu.pipeline_mode<synchronous>, transform_indices = @transform_7, window_bounds = array<i64: 2, 128>}]} {
    %c0_i32 = arith.constant 0 : i32
    %0 = arith.cmpi eq, %arg0, %c0_i32 : i32
    %1 = arith.extui %0 : i1 to i32
    %c0_i32_0 = arith.constant 0 : i32
    %2 = arith.cmpi ne, %1, %c0_i32_0 : i32
    scf.if %2 {
      %cst_26 = arith.constant 0.000000e+00 : f32
      %44 = vector.broadcast %cst_26 : f32 to vector<2x128xf32>
      %c0_27 = arith.constant 0 : index
      %c0_28 = arith.constant 0 : index
      %45 = vector.load %arg9[%c0_27, %c0_28] : memref<2x128xf32, #tpu.memory_space<vmem>>, vector<2x128xf32>
      tpu.vector_store %arg9[%c0_27, %c0_28], %44 {strides = array<i32>} : memref<2x128xf32, #tpu.memory_space<vmem>>, vector<2x128xf32>,
      %cst_29 = arith.constant 0.000000e+00 : f32
      %46 = vector.broadcast %cst_29 : f32 to vector<2x1xf32>
      %c0_30 = arith.constant 0 : index
      %c0_31 = arith.constant 0 : index
      %47 = vector.load %arg11[%c0_30, %c0_31] : memref<2x1xf32, #tpu.memory_space<vmem>>, vector<2x1xf32>
      tpu.vector_store %arg11[%c0_30, %c0_31], %46 {strides = array<i32>} : memref<2x1xf32, #tpu.memory_space<vmem>>, vector<2x1xf32>,
      %cst_32 = arith.constant -3.40282347E+38 : f32
      %48 = vector.broadcast %cst_32 : f32 to vector<2x128xf32>
      %c0_33 = arith.constant 0 : index
      %c0_34 = arith.constant 0 : index
      %49 = vector.load %arg10[%c0_33, %c0_34] : memref<2x128xf32, #tpu.memory_space<vmem>>, vector<2x128xf32>
      tpu.vector_store %arg10[%c0_33, %c0_34], %48 {strides = array<i32>} : memref<2x128xf32, #tpu.memory_space<vmem>>, vector<2x128xf32>,
    } else {
    }
    %c0 = arith.constant 0 : index
    %c0_1 = arith.constant 0 : index
    %3 = vector.load %arg1[%c0, %c0_1] : memref<128x128xf32, #tpu.memory_space<vmem>>, vector<128x128xf32>
    %c0_2 = arith.constant 0 : index
    %c0_3 = arith.constant 0 : index
    %4 = vector.load %arg2[%c0_2, %c0_3] : memref<1x128xi32, #tpu.memory_space<vmem>>, vector<1x128xi32>
    %c0_4 = arith.constant 0 : index
    %c0_5 = arith.constant 0 : index
    %5 = vector.load %arg3[%c0_4, %c0_5] : memref<128x1xi32, #tpu.memory_space<vmem>>, vector<128x1xi32>
    %6 = tpu.iota {dimensions = array<i32: 0>} : vector<2x1xi32>
    %7 = vector.broadcast %4 : vector<1x128xi32> to vector<2x128xi32>
    %8 = vector.broadcast %6 : vector<2x1xi32> to vector<2x128xi32>
    %9 = arith.cmpi eq, %7, %8 : vector<2x128xi32>
    %10 = arith.extui %9 : vector<2x128xi1> to vector<2x128xi32>
    %11 = arith.sitofp %10 : vector<2x128xi32> to vector<2x128xf32>
    %c0_6 = arith.constant 0 : index
    %c0_7 = arith.constant 0 : index
    %12 = vector.load %arg9[%c0_6, %c0_7] : memref<2x128xf32, #tpu.memory_space<vmem>>, vector<2x128xf32>
    %cst = arith.constant dense<0.000000e+00> : vector<2x128xf32>
    %13 = tpu.matmul %11, %3, %cst {dimension_numbers = #tpu.dot_dimension_numbers<[1], [0], [0], [1], [0, 0, 1, 1], [], []>} : vector<2x128xf32>, vector<128x128xf32>, vector<2x128xf32> -> vector<2x128xf32>
    %14 = arith.addf %12, %13 : vector<2x128xf32>
    %c0_8 = arith.constant 0 : index
    %c0_9 = arith.constant 0 : index
    %15 = vector.load %arg9[%c0_8, %c0_9] : memref<2x128xf32, #tpu.memory_space<vmem>>, vector<2x128xf32>
    tpu.vector_store %arg9[%c0_8, %c0_9], %14 {strides = array<i32>} : memref<2x128xf32, #tpu.memory_space<vmem>>, vector<2x128xf32>,
    %c0_10 = arith.constant 0 : index
    %c0_11 = arith.constant 0 : index
    %16 = vector.load %arg11[%c0_10, %c0_11] : memref<2x1xf32, #tpu.memory_space<vmem>>, vector<2x1xf32>
    %cst_12 = arith.constant dense<0.000000e+00> : vector<2xf32>
    %17 = vector.multi_reduction <add>, %11, %cst_12 [1] : vector<2x128xf32> to vector<2xf32>
    %18 = vector.shape_cast %17 : vector<2xf32> to vector<2x1xf32>
    %19 = arith.addf %16, %18 : vector<2x1xf32>
    %c0_13 = arith.constant 0 : index
    %c0_14 = arith.constant 0 : index
    %20 = vector.load %arg11[%c0_13, %c0_14] : memref<2x1xf32, #tpu.memory_space<vmem>>, vector<2x1xf32>
    tpu.vector_store %arg11[%c0_13, %c0_14], %19 {strides = array<i32>} : memref<2x1xf32, #tpu.memory_space<vmem>>, vector<2x1xf32>,
    %c0_i32_15 = arith.constant 0 : i32
    %21 = vector.broadcast %c0_i32_15 : i32 to vector<128x1xi32>
    %22 = arith.cmpi eq, %5, %21 : vector<128x1xi32>
    %cst_16 = arith.constant -3.40282347E+38 : f32
    %23 = vector.shape_cast %22 : vector<128x1xi1> to vector<128x1xi1>
    %24 = vector.broadcast %23 : vector<128x1xi1> to vector<128x128xi1>
    %25 = vector.broadcast %cst_16 : f32 to vector<128x128xf32>
    %26 = arith.select %24, %3, %25 : vector<128x128xi1>, vector<128x128xf32>
    %cst_17 = arith.constant dense<0xFF800000> : vector<128xf32>
    %27 = vector.multi_reduction <maximumf>, %26, %cst_17 [0] : vector<128x128xf32> to vector<128xf32>
    %28 = vector.shape_cast %27 : vector<128xf32> to vector<1x128xf32>
    %c1_i32 = arith.constant 1 : i32
    %29 = vector.broadcast %c1_i32 : i32 to vector<128x1xi32>
    %30 = arith.cmpi eq, %5, %29 : vector<128x1xi32>
    %cst_18 = arith.constant -3.40282347E+38 : f32
    %31 = vector.shape_cast %30 : vector<128x1xi1> to vector<128x1xi1>
    %32 = vector.broadcast %31 : vector<128x1xi1> to vector<128x128xi1>
    %33 = vector.broadcast %cst_18 : f32 to vector<128x128xf32>
    %34 = arith.select %32, %3, %33 : vector<128x128xi1>, vector<128x128xf32>
    %cst_19 = arith.constant dense<0xFF800000> : vector<128xf32>
    %35 = vector.multi_reduction <maximumf>, %34, %cst_19 [0] : vector<128x128xf32> to vector<128xf32>
    %36 = vector.shape_cast %35 : vector<128xf32> to vector<1x128xf32>
    %c0_20 = arith.constant 0 : index
    %c0_21 = arith.constant 0 : index
    %37 = vector.load %arg10[%c0_20, %c0_21] : memref<2x128xf32, #tpu.memory_space<vmem>>, vector<2x128xf32>
    %38 = tpu.concatenate %28, %36 in 0 : vector<1x128xf32>, vector<1x128xf32> -> vector<2x128xf32>
    %39 = arith.maximumf %37, %38 : vector<2x128xf32>
    %c0_22 = arith.constant 0 : index
    %c0_23 = arith.constant 0 : index
    %40 = vector.load %arg10[%c0_22, %c0_23] : memref<2x128xf32, #tpu.memory_space<vmem>>, vector<2x128xf32>
    tpu.vector_store %arg10[%c0_22, %c0_23], %39 {strides = array<i32>} : memref<2x128xf32, #tpu.memory_space<vmem>>, vector<2x128xf32>,
    %c0_i32_24 = arith.constant 0 : i32
    %41 = arith.cmpi eq, %arg0, %c0_i32_24 : i32
    %42 = arith.extui %41 : i1 to i32
    %c0_i32_25 = arith.constant 0 : i32
    %43 = arith.cmpi ne, %42, %c0_i32_25 : i32
    scf.if %43 {
      %c0_26 = arith.constant 0 : index
      %c0_27 = arith.constant 0 : index
      %44 = vector.load %arg11[%c0_26, %c0_27] : memref<2x1xf32, #tpu.memory_space<vmem>>, vector<2x1xf32>
      %c0_28 = arith.constant 0 : index
      %c0_29 = arith.constant 0 : index
      %45 = vector.load %arg9[%c0_28, %c0_29] : memref<2x128xf32, #tpu.memory_space<vmem>>, vector<2x128xf32>
      %cst_30 = arith.constant 1.000000e+00 : f32
      %46 = vector.broadcast %cst_30 : f32 to vector<2x1xf32>
      %47 = arith.maximumf %44, %46 : vector<2x1xf32>
      %48 = tpu.reciprocal %47 {approx = true} : vector<2x1xf32> -> vector<2x1xf32>
      %49 = vector.broadcast %48 : vector<2x1xf32> to vector<2x128xf32>
      %50 = arith.mulf %45, %49 : vector<2x128xf32>
      %cst_31 = arith.constant 0.000000e+00 : f32
      %51 = vector.broadcast %cst_31 : f32 to vector<2x1xf32>
      %52 = arith.cmpf ogt, %44, %51 : vector<2x1xf32>
      %c0_32 = arith.constant 0 : index
      %c0_33 = arith.constant 0 : index
      %53 = vector.load %arg10[%c0_32, %c0_33] : memref<2x128xf32, #tpu.memory_space<vmem>>, vector<2x128xf32>
      %cst_34 = arith.constant 0.000000e+00 : f32
      %54 = vector.shape_cast %52 : vector<2x1xi1> to vector<2x1xi1>
      %55 = vector.broadcast %54 : vector<2x1xi1> to vector<2x128xi1>
      %56 = vector.broadcast %cst_34 : f32 to vector<2x128xf32>
      %57 = arith.select %55, %53, %56 : vector<2x128xi1>, vector<2x128xf32>
      %c0_35 = arith.constant 0 : index
      %c0_36 = arith.constant 0 : index
      %58 = vector.load %arg4[%c0_35, %c0_36] : memref<384x128xf32, #tpu.memory_space<vmem>>, vector<128x128xf32>
      %cst_37 = arith.constant dense<0.000000e+00> : vector<2x128xf32>
      %59 = tpu.matmul %50, %58, %cst_37 {dimension_numbers = #tpu.dot_dimension_numbers<[1], [0], [0], [1], [0, 0, 1, 1], [], []>} : vector<2x128xf32>, vector<128x128xf32>, vector<2x128xf32> -> vector<2x128xf32>
      %c128 = arith.constant 128 : index
      %c0_38 = arith.constant 0 : index
      %60 = vector.load %arg4[%c128, %c0_38] : memref<384x128xf32, #tpu.memory_space<vmem>>, vector<128x128xf32>
      %cst_39 = arith.constant dense<0.000000e+00> : vector<2x128xf32>
      %61 = tpu.matmul %57, %60, %cst_39 {dimension_numbers = #tpu.dot_dimension_numbers<[1], [0], [0], [1], [0, 0, 1, 1], [], []>} : vector<2x128xf32>, vector<128x128xf32>, vector<2x128xf32> -> vector<2x128xf32>
      %62 = arith.addf %59, %61 : vector<2x128xf32>
      %c256 = arith.constant 256 : index
      %c0_40 = arith.constant 0 : index
      %63 = vector.load %arg4[%c256, %c0_40] : memref<384x128xf32, #tpu.memory_space<vmem>>, vector<128x128xf32>
      %cst_41 = arith.constant dense<0.000000e+00> : vector<2x128xf32>
      %64 = tpu.matmul %45, %63, %cst_41 {dimension_numbers = #tpu.dot_dimension_numbers<[1], [0], [0], [1], [0, 0, 1, 1], [], []>} : vector<2x128xf32>, vector<128x128xf32>, vector<2x128xf32> -> vector<2x128xf32>
      %65 = arith.addf %62, %64 : vector<2x128xf32>
      %c0_42 = arith.constant 0 : index
      %c0_43 = arith.constant 0 : index
      %66 = vector.load %arg5[%c0_42, %c0_43] : memref<1x128xf32, #tpu.memory_space<vmem>>, vector<1x128xf32>
      %67 = vector.broadcast %66 : vector<1x128xf32> to vector<2x128xf32>
      %68 = arith.addf %65, %67 : vector<2x128xf32>
      %cst_44 = arith.constant dense<0.000000e+00> : vector<2xf32>
      %69 = vector.multi_reduction <add>, %68, %cst_44 [1] : vector<2x128xf32> to vector<2xf32>
      %70 = vector.shape_cast %69 : vector<2xf32> to vector<2x1xf32>
      %cst_45 = arith.constant 1.280000e+02 : f32
      %71 = vector.broadcast %cst_45 : f32 to vector<2x1xf32>
      %72 = arith.divf %70, %71 : vector<2x1xf32>
      %73 = vector.broadcast %72 : vector<2x1xf32> to vector<2x128xf32>
      %74 = arith.subf %68, %73 : vector<2x128xf32>
      %75 = arith.mulf %74, %74 : vector<2x128xf32>
      %cst_46 = arith.constant dense<0.000000e+00> : vector<2xf32>
      %76 = vector.multi_reduction <add>, %75, %cst_46 [1] : vector<2x128xf32> to vector<2xf32>
      %77 = vector.shape_cast %76 : vector<2xf32> to vector<2x1xf32>
      %cst_47 = arith.constant 1.280000e+02 : f32
      %78 = vector.broadcast %cst_47 : f32 to vector<2x1xf32>
      %79 = arith.divf %77, %78 : vector<2x1xf32>
      %80 = vector.broadcast %72 : vector<2x1xf32> to vector<2x128xf32>
      %81 = arith.subf %68, %80 : vector<2x128xf32>
      %cst_48 = arith.constant 9.99999974E-6 : f32
      %82 = vector.broadcast %cst_48 : f32 to vector<2x1xf32>
      %83 = arith.addf %79, %82 : vector<2x1xf32>
      %84 = math.rsqrt %83 : vector<2x1xf32>
      %85 = vector.broadcast %84 : vector<2x1xf32> to vector<2x128xf32>
      %86 = arith.mulf %81, %85 : vector<2x128xf32>
      %c0_49 = arith.constant 0 : index
      %c0_50 = arith.constant 0 : index
      %87 = vector.load %arg6[%c0_49, %c0_50] : memref<1x128xf32, #tpu.memory_space<vmem>>, vector<1x128xf32>
      %88 = vector.broadcast %87 : vector<1x128xf32> to vector<2x128xf32>
      %89 = arith.mulf %86, %88 : vector<2x128xf32>
      %c0_51 = arith.constant 0 : index
      %c0_52 = arith.constant 0 : index
      %90 = vector.load %arg7[%c0_51, %c0_52] : memref<1x128xf32, #tpu.memory_space<vmem>>, vector<1x128xf32>
      %91 = vector.broadcast %90 : vector<1x128xf32> to vector<2x128xf32>
      %92 = arith.addf %89, %91 : vector<2x128xf32>
      %cst_53 = arith.constant 5.000000e-01 : f32
      %93 = vector.broadcast %cst_53 : f32 to vector<2x128xf32>
      %94 = arith.mulf %93, %92 : vector<2x128xf32>
      %cst_54 = arith.constant 0.707106769 : f32
      %95 = vector.broadcast %cst_54 : f32 to vector<2x128xf32>
      %96 = arith.mulf %92, %95 : vector<2x128xf32>
      %97 = math.erf %96 : vector<2x128xf32>
      %cst_55 = arith.constant 1.000000e+00 : f32
      %98 = vector.broadcast %cst_55 : f32 to vector<2x128xf32>
      %99 = arith.addf %98, %97 : vector<2x128xf32>
      %100 = arith.mulf %94, %99 : vector<2x128xf32>
      %c0_56 = arith.constant 0 : index
      %c0_57 = arith.constant 0 : index
      %101 = vector.load %arg8[%c0_56, %c0_57] : memref<2x128xf32, #tpu.memory_space<vmem>>, vector<2x128xf32>
      tpu.vector_store %arg8[%c0_56, %c0_57], %100 {strides = array<i32>} : memref<2x128xf32, #tpu.memory_space<vmem>>, vector<2x128xf32>,
    } else {
    }
    return
  }
  func.func @transform_0(%arg0: i32) -> (i32, i32) {
    %c0_i32 = arith.constant 0 : i32
    %c0_i32_0 = arith.constant 0 : i32
    return %arg0, %c0_i32 : i32, i32
  }
  func.func @transform_1(%arg0: i32) -> (i32, i32) {
    %c0_i32 = arith.constant 0 : i32
    %c0_i32_0 = arith.constant 0 : i32
    return %c0_i32, %arg0 : i32, i32
  }
  func.func @transform_2(%arg0: i32) -> (i32, i32) {
    %c0_i32 = arith.constant 0 : i32
    %c0_i32_0 = arith.constant 0 : i32
    return %arg0, %c0_i32 : i32, i32
  }
  func.func @transform_3(%arg0: i32) -> (i32, i32) {
    %c0_i32 = arith.constant 0 : i32
    %c0_i32_0 = arith.constant 0 : i32
    %c0_i32_1 = arith.constant 0 : i32
    return %c0_i32, %c0_i32_0 : i32, i32
  }
  func.func @transform_4(%arg0: i32) -> (i32, i32) {
    %c0_i32 = arith.constant 0 : i32
    %c0_i32_0 = arith.constant 0 : i32
    %c0_i32_1 = arith.constant 0 : i32
    return %c0_i32, %c0_i32_0 : i32, i32
  }
  func.func @transform_5(%arg0: i32) -> (i32, i32) {
    %c0_i32 = arith.constant 0 : i32
    %c0_i32_0 = arith.constant 0 : i32
    %c0_i32_1 = arith.constant 0 : i32
    return %c0_i32, %c0_i32_0 : i32, i32
  }
  func.func @transform_6(%arg0: i32) -> (i32, i32) {
    %c0_i32 = arith.constant 0 : i32
    %c0_i32_0 = arith.constant 0 : i32
    %c0_i32_1 = arith.constant 0 : i32
    return %c0_i32, %c0_i32_0 : i32, i32
  }
  func.func @transform_7(%arg0: i32) -> (i32, i32) {
    %c0_i32 = arith.constant 0 : i32
    %c0_i32_0 = arith.constant 0 : i32
    %c0_i32_1 = arith.constant 0 : i32
    return %c0_i32, %c0_i32_0 : i32, i32
  }
}

</mosaic_0001>

<bundles_post_ra>
// kernel: tpu_custom_call.1
= control target key start
LH: loop header
LB: loop body
LE: loop exit
PB: predicated region body
PF: predicated region fallthrough
CT: control target
= control target key end

     0   :  { %12 = vsyncpa [#allocation6], 0  ;;  %s1574_s0 = inlined_call_operand.vmem [shape: f32[128,128], index: 0, kind: input, shape index: {}]   ;;  %s1575_s1 = inlined_call_operand.vmem [shape: s32[1,128], index: 1, kind: input, shape index: {}]   ;;  %s1576_s2 = inlined_call_operand.vmem [shape: s32[128,1], index: 2, kind: input, shape index: {}]   ;;  %s1577_s3 = inlined_call_operand.hbm [shape: f32[384,128], index: 3, kind: input, shape index: {}]   ;;  %s1578_s4 = inlined_call_operand.vmem [shape: f32[1,128], index: 4, kind: input, shape index: {}]   ;;  %s1579_s5 = inlined_call_operand.vmem [shape: f32[1,128], index: 5, kind: input, shape index: {}]   ;;  %s1580_s6 = inlined_call_operand.vmem [shape: f32[1,128], index: 6, kind: input, shape index: {}]   ;;  %s1581_s7 = inlined_call_operand.hbm [shape: f32[2,128], index: 7, kind: output, shape index: {}]  }
   0x1   :  { %13 = vsyncpa [#allocation7], 0  ;;  %s1159_s24 = smov [#allocation5]   ;;  %s1111_s28 = scalar_lea.hbm %s1577_s3, 6144 }
   0x2   :  { %s25_s25 = sshll.u32 %s1159_s24, 4  ;;  %p1112_p0 = scmp.ne.s32.totalorder %s1577_s3, %s1111_s28  ;;  %s26_s25 = int_to_ptr.vmem [resolvable:$true] %s25_s25 }
   0x3   :  { %p1115_p1 = scmp.lt.u32.totalorder %s1111_s28, %s1577_s3 }
   0x5   :  { %p1117_p2 = pnand %p1115_p1, %p1112_p0 }
   0x7   :  { %1120 = shalt.err (!%p1117_p2)
}
   0x8   :  { %s1121_s10 = scalar_lea.vmem %s26_s25, 6144  ;;  %p1126_p4 = scmp.lt.s32.totalorder %s26_s25, %s26_s25 }
   0x9   :  { %p1122_p3 = scmp.ne.s32.totalorder %s26_s25, %s1121_s10  ;;  %p1127_p5 = scmp.lt.s32.totalorder %s1121_s10, %s1121_s10 }
   0xb   :  { %p1128_p6 = por %p1127_p5, %p1126_p4 }
   0xd   :  { %p1129_p7 = pnand %p1128_p6, %p1122_p3 }
   0xf   :  { %1132 = shalt.err (!%p1129_p7)
}
  0x10   :  { %s1160_s11 = smov 128   ;;  %s1161_s12 = smov 8  }
  0x11   :  { %31 = dma.hbm_to_vmem [thread:$0]  %s1577_s3, 6144, %s26_s25, [#allocation6], %s1160_s11, %s1160_s11, %s1161_s12  }
  0x12   :  { %1155 = dma.done.wait [#allocation6], 6144  }
  0x13   :  { %1156 = vsyncadd [#allocation6], 4294961152  ;;  %v82_v0 = vlaneseq  ;;  %v1162_v1 = vmov 0   ;;  %v1163_v2 = vmov 0.0   ;;  %v1164_v3 = vmov 0.0|0.0   ;;  %v1235_v5 = vld [vmem:[%s1576_s2 + $0x8] sm:$0xff] }
  0x14   :  { %1104 = vset.pattern.permute.xlu1 %v1162_v1  ;;  %45 = vst [vmem:[#allocation2] sm:$0x3] %v1163_v2  ;;  %1103 = vset.pattern.permute.xlu0 %v1162_v1  ;;  %vm1165_vm0 = vmmov 0   ;;  %v1240_v6 = vld [vmem:[%s1575_s1] ss:$0 sm:$0xff]  ;;  %vm165_vm1 = vcmask 1041408  }
  0x15   :  { %997 = vmatprep.subr.bf16.mxu0 %v1164_v3  ;;  %889 = vmatprep.mubr.msk.f32.mxu0 %vm1165_vm0, %v1163_v2  ;;  %v1230_v4 = vshrl.u32 %v82_v0, 7  ;;  %v1245_v7 = vld [vmem:[%s1576_s2 + $0x10] sm:$0xff]  ;;  %vm173_vm2 = vcmp.eq.s32.totalorder %v1235_v5, 0  ;;  %v1259_v10 = vld [vmem:[%s1576_s2 + $0x18] sm:$0xff]  ;;  %v1267_v13 = vld [vmem:[%s1576_s2 + $0x20] sm:$0xff]  ;;  %vm46_vm9 = vcmask 1024  }
  0x16   :  { %1021 = vmatprep.subr.bf16.mxu1 %v1164_v3  ;;  %924 = vmatprep.mubr.msk.f32.mxu1 %vm1165_vm0, %v1163_v2  ;;  %vm174_vm4 = vcmp.eq.s32.totalorder %v1245_v7, 0  ;;  %v189_v8 = vsel %vm173_vm2, 1, %v1162_v1  ;;  %vm175_vm5 = vcmp.eq.s32.totalorder %v1259_v10, 0  ;;  %v1272_v14 = vld [vmem:[%s1574_s0] sm:$0xff]  ;;  %v1277_v15 = vld [vmem:[%s1574_s0 + $0x8] sm:$0xff]  ;;  %v1283_v17 = vld [vmem:[%s1574_s0 + $0x10] sm:$0xff] }
  0x17   :  { %vm88_vm3 = vcmp.eq.s32.totalorder %v1240_v6, %v1230_v4  ;;  %208 = vperm.xlu1 %1104, %v189_v8   ;;  %v190_v12 = vsel %vm174_vm4, 1, %v1162_v1  ;;  %v191_v16 = vsel %vm175_vm5, 1, %v1162_v1  ;;  %v1288_v18 = vld [vmem:[%s1574_s0 + $0x18] sm:$0xff]  ;;  %vm176_vm6 = vcmp.eq.s32.totalorder %v1267_v13, 0  ;;  %v71_v20 = vld [vmem:[%s1576_s2 + $0x28] sm:$0xff]  ;;  %v1303_v23 = vld [vmem:[%s1574_s0 + $0x20] sm:$0xff] }
  0x18   :  { %v783_v9 = vsel %vm88_vm3, 1.0, %v1163_v2  ;;  %v998_v19 = vpack.c.bf16 %v1277_v15, %v1272_v14  ;;  %v1001_v21 = vpack.c.bf16 %v1288_v18, %v1283_v17  ;;  %v192_v22 = vsel %vm176_vm6, 1, %v1162_v1  ;;  %v1308_v24 = vld [vmem:[%s1574_s0 + $0x28] sm:$0xff]  ;;  %v1313_v25 = vld [vmem:[%s1576_s2 + $0x30] sm:$0xff]  ;;  %v1327_v29 = vld [vmem:[%s1574_s0 + $0x38] sm:$0xff]  ;;  %s1168_s9 = smov [#allocation8]  }
  0x19   :  { %v166_v11 = vsel %vm165_vm1, %v783_v9, 0.0  ;;  %vm177_vm7 = vcmp.eq.s32.totalorder %v71_v20, 0  ;;  %v1004_v26 = vpack.c.bf16 %v1308_v24, %v1303_v23  ;;  %v1322_v28 = vld [vmem:[%s1574_s0 + $0x30] sm:$0xff]  ;;  %vm178_vm8 = vcmp.eq.s32.totalorder %v1313_v25, 0  ;;  %v66_v30 = vld [vmem:[%s1576_s2] sm:$0xff]  ;;  %v73_v31 = vld [vmem:[%s1576_s2 + $0x38] sm:$0xff] }
  0x1a   :  { %167 = vadd.xlane.f32.xlu0 %v166_v11  ;;  %999 = vmatpush3.bf16.msra.mxu0 %v998_v19  ;;  %v193_v27 = vsel %vm177_vm7, 1, %v1162_v1  ;;  %v1007_v32 = vpack.c.bf16 %v1327_v29, %v1322_v28  ;;  %v194_v33 = vsel %vm178_vm8, 1, %v1162_v1  ;;  %vm172_vm10 = vcmp.eq.s32.totalorder %v66_v30, 0  ;;  %v1343_v34 = vld [vmem:[%s1574_s0 + $0x40] sm:$0xff]  ;;  %v1348_v35 = vld [vmem:[%s1574_s0 + $0x48] sm:$0xff]  ;;  %v1360_v39 = vld [vmem:[%s1574_s0 + $0x50] sm:$0xff] }
  0x1b   :  { %211 = vperm.xlu1 %1104, %v190_v12   ;;  %1000 = vmatprep.subr.bf16.mxu0 %v1164_v3  ;;  %47 = vst.msk [vmem:[#allocation4] sm:$0x3] %vm46_vm9, %v1163_v2  ;;  %vm179_vm11 = vcmp.eq.s32.totalorder %v73_v31, 0  ;;  %v188_v36 = vsel %vm172_vm10, 1, %v1162_v1  ;;  %v1010_v37 = vpack.c.bf16 %v1348_v35, %v1343_v34  ;;  %vm310_vm12 = vcmp.eq.s32.totalorder %v71_v20, 1  ;;  %v1365_v40 = vld [vmem:[%s1574_s0 + $0x58] sm:$0xff] }
  0x1c   :  { %v195_v38 = vsel %vm179_vm11, 1, %v1162_v1  ;;  %vm305_vm13 = vcmp.eq.s32.totalorder %v66_v30, 1  ;;  %v326_v41 = vsel %vm310_vm12, 1, %v1162_v1  ;;  %v1013_v42 = vpack.c.bf16 %v1365_v40, %v1360_v39  ;;  %v1375_v44 = vld [vmem:[%s1574_s0 + $0x60] sm:$0xff]  ;;  %v1380_v45 = vld [vmem:[%s1574_s0 + $0x68] sm:$0xff]  ;;  %v1394_v50 = vld [vmem:[%s1574_s0 + $0x70] sm:$0xff] }
  0x1d   :  { %v321_v43 = vsel %vm305_vm13, 1, %v1162_v1  ;;  %vm312_vm14 = vcmp.eq.s32.totalorder %v73_v31, 1  ;;  %vm306_vm15 = vcmp.eq.s32.totalorder %v1235_v5, 1  ;;  %v75_v46 = vld [vmem:[%s1576_s2 + $0x48] sm:$0xff]  ;;  %v1016_v48 = vpack.c.bf16 %v1380_v45, %v1375_v44  ;;  %v1399_v51 = vld [vmem:[%s1574_s0 + $0x78] sm:$0xff]  ;;  %v74_v62 = vld [vmem:[%s1576_s2 + $0x40] sm:$0xff] }
  0x1e   :  { %1002 = vmatpush3.bf16.msra.mxu0 %v1001_v21  ;;  %v328_v47 = vsel %vm312_vm14, 1, %v1162_v1  ;;  %v322_v49 = vsel %vm306_vm15, 1, %v1162_v1  ;;  %vm181_vm2 = vcmp.eq.s32.totalorder %v75_v46, 0  ;;  %vm307_vm4 = vcmp.eq.s32.totalorder %v1245_v7, 1  ;;  %v77_v52 = vld [vmem:[%s1576_s2 + $0x58] sm:$0xff]  ;;  %v79_v61 = vld [vmem:[%s1576_s2 + $0x68] sm:$0xff] }
  0x1f   :  { %214 = vperm.xlu1 %1104, %v191_v16   ;;  %1003 = vmatprep.subr.bf16.mxu0 %v1164_v3  ;;  %v197_v53 = vsel %vm181_vm2, 1, %v1162_v1  ;;  %v1019_v54 = vpack.c.bf16 %v1399_v51, %v1394_v50  ;;  %v323_v55 = vsel %vm307_vm4, 1, %v1162_v1  ;;  %vm183_vm5 = vcmp.eq.s32.totalorder %v77_v52, 0  ;;  %v81_v4 = vld [vmem:[%s1576_s2 + $0x78] sm:$0xff]  ;;  %v76_v5 = vld [vmem:[%s1576_s2 + $0x50] sm:$0xff]  ;;  %v78_v12 = vld [vmem:[%s1576_s2 + $0x60] sm:$0xff] }
  0x20   :  { %vm308_vm6 = vcmp.eq.s32.totalorder %v1259_v10, 1  ;;  %v199_v56 = vsel %vm183_vm5, 1, %v1162_v1  ;;  %vm314_vm7 = vcmp.eq.s32.totalorder %v75_v46, 1  ;;  %vm309_vm8 = vcmp.eq.s32.totalorder %v1267_v13, 1  ;;  %v80_v19 = vld [vmem:[%s1576_s2 + $0x70] sm:$0xff]  ;;  %s773_s10 = sshll.u32 %s1168_s9, 4  ;;  %s774_s10 = int_to_ptr.vmem [resolvable:$true] %s773_s10 }
  0x21   :  { %v324_v57 = vsel %vm308_vm6, 1, %v1162_v1  ;;  %v1166_v58 = vmov 1.0   ;;  %v330_v59 = vsel %vm314_vm7, 1, %v1162_v1  ;;  %v325_v60 = vsel %vm309_vm8, 1, %v1162_v1  ;;  %v481_v30 = vld [vmem:[#allocation5 + $0x88] sm:$0xff]  ;;  %v482_v31 = vld [vmem:[#allocation5 + $0x90] sm:$0xff]  ;;  %p1138_p9 = scmp.lt.s32.totalorder %s774_s10, %s774_s10 }
  0x22   :  { %1005 = vmatpush3.bf16.msra.mxu0 %v1004_v26  ;;  %vm316_vm10 = vcmp.eq.s32.totalorder %v77_v52, 1  ;;  %vm311_vm11 = vcmp.eq.s32.totalorder %v1313_v25, 1  ;;  %vm180_vm12 = vcmp.eq.s32.totalorder %v74_v62, 0  ;;  %vm187_vm13 = vcmp.eq.s32.totalorder %v81_v4, 0  ;;  %v466_v46 = vld [vmem:[#allocation5 + $0x10] sm:$0xff]  ;;  %v468_v52 = vld [vmem:[#allocation5 + $0x20] sm:$0xff] }
  0x23   :  { %217 = vperm.xlu1 %1104, %v192_v22   ;;  %1006 = vmatprep.subr.bf16.mxu0 %v1164_v3  ;;  %v332_v63 = vsel %vm316_vm10, 1, %v1162_v1  ;;  %v327_v0 = vsel %vm311_vm11, 1, %v1162_v1  ;;  %v196_v7 = vsel %vm180_vm12, 1, %v1162_v1  ;;  %vm182_vm14 = vcmp.eq.s32.totalorder %v76_v5, 0  ;;  %s1133_s11 = scalar_lea.vmem %s774_s10, 32 }
  0x24   :  { %v203_v8 = vsel %vm187_vm13, 1, %v1162_v1  ;;  %v198_v9 = vsel %vm182_vm14, 1, %v1162_v1  ;;  %vm318_vm15 = vcmp.eq.s32.totalorder %v79_v61, 1  ;;  %vm313_vm2 = vcmp.eq.s32.totalorder %v74_v62, 1  ;;  %p1134_p8 = scmp.ne.s32.totalorder %s774_s10, %s1133_s11  ;;  %p1139_p10 = scmp.lt.s32.totalorder %s1133_s11, %s1133_s11 }
  0x25   :  { %v334_v10 = vsel %vm318_vm15, 1, %v1162_v1  ;;  %v329_v11 = vsel %vm313_vm2, 1, %v1162_v1  ;;  %vm320_vm4 = vcmp.eq.s32.totalorder %v81_v4, 1  ;;  %vm315_vm5 = vcmp.eq.s32.totalorder %v76_v5, 1  ;;  %v473_v4 = vld [vmem:[#allocation5 + $0x48] sm:$0xff]  ;;  %v490_v5 = vld [vmem:[#allocation5 + $0xd0] sm:$0xff] }
  0x26   :  { %1008 = vmatpush3.bf16.msra.mxu0 %v1007_v32  ;;  %v336_v13 = vsel %vm320_vm4, 1, %v1162_v1  ;;  %v331_v16 = vsel %vm315_vm5, 1, %v1162_v1  ;;  %vm184_vm6 = vcmp.eq.s32.totalorder %v78_v12, 0  ;;  %vm186_vm7 = vcmp.eq.s32.totalorder %v80_v19, 0  ;;  %p1140_p11 = por %p1139_p10, %p1138_p9 }
  0x27   :  { %220 = vperm.xlu1 %1104, %v193_v27   ;;  %1009 = vmatprep.subr.bf16.mxu0 %v1164_v3  ;;  %v200_v20 = vsel %vm184_vm6, 1, %v1162_v1  ;;  %v202_v21 = vsel %vm186_vm7, 1, %v1162_v1  ;;  %vm317_vm8 = vcmp.eq.s32.totalorder %v78_v12, 1  ;;  %vm319_vm10 = vcmp.eq.s32.totalorder %v80_v19, 1  ;;  %v480_v27 = vld [vmem:[#allocation5 + $0x80] sm:$0xff] }
  0x28   :  { %v333_v22 = vsel %vm317_vm8, 1, %v1162_v1  ;;  %v335_v25 = vsel %vm319_vm10, 1, %v1162_v1  ;;  %v1167_v26 = vmov -3.4028235e+38   ;;  %v1022_v32 = vpack.c.bf16 %v481_v30, %v480_v27  ;;  %p1141_p12 = pnand %p1140_p11, %p1134_p8 }
  0x29   :  { %48 = vst [vmem:[#allocation3] sm:$0x3] %v1167_v26 }
  0x2a   :  { %1011 = vmatpush3.bf16.msra.mxu0 %v1010_v37  ;;  %1023 = vmatpush3.bf16.msra.mxu1 %v1022_v32 }
  0x2b   :  { %223 = vperm.xlu1 %1104, %v194_v33   ;;  %1012 = vmatprep.subr.bf16.mxu0 %v1164_v3  ;;  %v483_v33 = vld [vmem:[#allocation5 + $0x98] sm:$0xff] }
  0x2c   :  { %v1025_v37 = vpack.c.bf16 %v483_v33, %v482_v31  ;;  %1024 = vmatprep.subr.bf16.mxu1 %v1164_v3 }
  0x2e   :  { %1014 = vmatpush3.bf16.msra.mxu0 %v1013_v42  ;;  %v485_v42 = vld [vmem:[#allocation5 + $0xa8] sm:$0xff]  ;;  %1026 = vmatpush3.bf16.msra.mxu1 %v1025_v37 }
  0x2f   :  { %226 = vperm.xlu1 %1104, %v195_v38   ;;  %1015 = vmatprep.subr.bf16.mxu0 %v1164_v3  ;;  %v484_v38 = vld [vmem:[#allocation5 + $0xa0] sm:$0xff] }
  0x30   :  { %205 = vperm.xlu0 %1103, %v188_v36   ;;  %v464_v36 = vld [vmem:[#allocation5] sm:$0xff]  ;;  %1027 = vmatprep.subr.bf16.mxu1 %v1164_v3 }
  0x32   :  { %1017 = vmatpush3.bf16.msra.mxu0 %v1016_v48 }
  0x33   :  { %338 = vperm.xlu1 %1104, %v321_v43   ;;  %1018 = vmatprep.subr.bf16.mxu0 %v1164_v3 }
  0x34   :  { %353 = vperm.xlu0 %1103, %v326_v41   ;;  %v465_v41 = vld [vmem:[#allocation5 + $0x8] sm:$0xff] }
  0x35   :  { %v1046_v43 = vpack.c.bf16 %v465_v41, %v464_v36 }
  0x36   :  { %1020 = vmatpush3.bf16.msra.mxu0 %v1019_v54  ;;  %v486_v54 = vld [vmem:[#allocation5 + $0xb0] sm:$0xff] }
  0x37   :  { %341 = vperm.xlu1 %1104, %v322_v49   ;;  %1045 = vmatprep.subr.bf16.mxu0 %v1164_v3  ;;  %v1028_v49 = vpack.c.bf16 %v485_v42, %v484_v38 }
  0x38   :  { %359 = vperm.xlu0 %1103, %v328_v47   ;;  %v467_v47 = vld [vmem:[#allocation5 + $0x18] sm:$0xff] }
  0x39   :  { %890 = vmatmul.mubr.msk.f32.vlgmr.msra.gmra.mrb[0].mxu0 %vm88_vm3, %v1166_v58  ;;  %vm185_vm3 = vcmp.eq.s32.totalorder %v79_v61, 0  ;;  %v1049_v48 = vpack.c.bf16 %v467_v47, %v466_v46  ;;  %1029 = vmatpush3.bf16.msra.mxu1 %v1028_v49  ;;  %v470_v58 = vld [vmem:[#allocation5 + $0x30] sm:$0xff]  ;;  %v489_v61 = vld [vmem:[#allocation5 + $0xc8] sm:$0xff]  ;;  %v475_v46 = vld [vmem:[#allocation5 + $0x58] sm:$0xff] }
  0x3a   :  { %959 = vmatprep.mubr.msk.f32.mxu0 %vm1165_vm0, %v1163_v2  ;;  %v201_v6 = vsel %vm185_vm3, 1, %v1162_v1  ;;  %1047 = vmatpush3.bf16.msra.mxu0 %v1046_v43  ;;  %v474_v43 = vld [vmem:[#allocation5 + $0x50] sm:$0xff] }
  0x3b   :  { %344 = vperm.xlu1 %1104, %v323_v55   ;;  %1048 = vmatprep.subr.bf16.mxu0 %v1164_v3  ;;  %v487_v55 = vld [vmem:[#allocation5 + $0xb8] sm:$0xff]  ;;  %v1061_v47 = vpack.c.bf16 %v475_v46, %v474_v43 }
  0x3c   :  { %232 = vperm.xlu0 %1103, %v197_v53   ;;  %v469_v53 = vld [vmem:[#allocation5 + $0x28] sm:$0xff]  ;;  %1030 = vmatprep.subr.bf16.mxu1 %v1164_v3 }
  0x3e   :  { %1050 = vmatpush3.bf16.msra.mxu0 %v1049_v48 }
  0x3f   :  { %347 = vperm.xlu1 %1104, %v324_v57   ;;  %v1031_v57 = vpack.c.bf16 %v487_v55, %v486_v54  ;;  %1051 = vmatprep.subr.bf16.mxu0 %v1164_v3 }
  0x40   :  { %238 = vperm.xlu0 %1103, %v199_v56   ;;  %v1052_v56 = vpack.c.bf16 %v469_v53, %v468_v52  ;;  %v476_v52 = vld [vmem:[#allocation5 + $0x60] sm:$0xff]  ;;  %v477_v53 = vld [vmem:[#allocation5 + $0x68] sm:$0xff] }
  0x41   :  { %1032 = vmatpush3.bf16.msra.mxu1 %v1031_v57  ;;  %v1064_v54 = vpack.c.bf16 %v477_v53, %v476_v52  ;;  %v479_v57 = vld [vmem:[#allocation5 + $0x78] sm:$0xff] }
  0x42   :  { %1053 = vmatpush3.bf16.msra.mxu0 %v1052_v56  ;;  %1033 = vmatprep.subr.bf16.mxu1 %v1164_v3  ;;  %v478_v56 = vld [vmem:[#allocation5 + $0x70] sm:$0xff] }
  0x43   :  { %350 = vperm.xlu1 %1104, %v325_v60   ;;  %v488_v60 = vld [vmem:[#allocation5 + $0xc0] sm:$0xff]  ;;  %1054 = vmatprep.subr.bf16.mxu0 %v1164_v3 }
  0x44   :  { %365 = vperm.xlu0 %1103, %v330_v59   ;;  %v471_v59 = vld [vmem:[#allocation5 + $0x38] sm:$0xff] }
  0x45   :  { %v1055_v62 = vpack.c.bf16 %v471_v59, %v470_v58  ;;  %v1067_v58 = vpack.c.bf16 %v479_v57, %v478_v56 }
  0x47   :  { %356 = vperm.xlu1 %1104, %v327_v0   ;;  %v472_v0 = vld [vmem:[#allocation5 + $0x40] sm:$0xff]  ;;  %1056 = vmatpush3.bf16.msra.mxu0 %v1055_v62 }
  0x48   :  { %371 = vperm.xlu0 %1103, %v332_v63   ;;  %v1034_v63 = vpack.c.bf16 %v489_v61, %v488_v60  ;;  %1057 = vmatprep.subr.bf16.mxu0 %v1164_v3 }
  0x4a   :  { %1035 = vmatpush3.bf16.msra.mxu1 %v1034_v63 }
  0x4b   :  { %229 = vperm.xlu1 %1104, %v196_v7   ;;  %v1058_v7 = vpack.c.bf16 %v473_v4, %v472_v0  ;;  %1036 = vmatprep.subr.bf16.mxu1 %v1164_v3 }
  0x4c   :  { %244 = vperm.xlu0 %1103, %v201_v6   ;;  %v491_v6 = vld [vmem:[#allocation5 + $0xd8] sm:$0xff] }
  0x4d   :  { %1059 = vmatpush3.bf16.msra.mxu0 %v1058_v7 }
  0x4e   :  { %1060 = vmatprep.subr.bf16.mxu0 %v1164_v3 }
  0x4f   :  { %235 = vperm.xlu1 %1104, %v198_v9   ;;  %v492_v9 = vld [vmem:[#allocation5 + $0xe0] sm:$0xff] }
  0x50   :  { %250 = vperm.xlu0 %1103, %v203_v8   ;;  %v1037_v8 = vpack.c.bf16 %v491_v6, %v490_v5 }
  0x51   :  { %1062 = vmatpush3.bf16.msra.mxu0 %v1061_v47 }
  0x52   :  { %1038 = vmatpush3.bf16.msra.mxu1 %v1037_v8  ;;  %1063 = vmatprep.subr.bf16.mxu0 %v1164_v3 }
  0x53   :  { %362 = vperm.xlu1 %1104, %v329_v11   ;;  %1039 = vmatprep.subr.bf16.mxu1 %v1164_v3 }
  0x54   :  { %377 = vperm.xlu0 %1103, %v334_v10   ;;  %v493_v10 = vld [vmem:[#allocation5 + $0xe8] sm:$0xff] }
  0x55   :  { %v1040_v11 = vpack.c.bf16 %v493_v10, %v492_v9  ;;  %1065 = vmatpush3.bf16.msra.mxu0 %v1064_v54 }
  0x56   :  { %1066 = vmatprep.subr.bf16.mxu0 %v1164_v3 }
  0x57   :  { %368 = vperm.xlu1 %1104, %v331_v16   ;;  %v495_v16 = vld [vmem:[#allocation5 + $0xf8] sm:$0xff]  ;;  %1041 = vmatpush3.bf16.msra.mxu1 %v1040_v11 }
  0x58   :  { %383 = vperm.xlu0 %1103, %v336_v13   ;;  %v494_v13 = vld [vmem:[#allocation5 + $0xf0] sm:$0xff]  ;;  %1042 = vmatprep.subr.bf16.mxu1 %v1164_v3 }
  0x59   :  { %v1043_v19 = vpack.c.bf16 %v495_v16, %v494_v13  ;;  %1068 = vmatpush3.bf16.msra.mxu0 %v1067_v58 }
  0x5b   :  { %241 = vperm.xlu1 %1104, %v200_v20   ;;  %1044 = vmatpush3.bf16.msra.mxu1 %v1043_v19 }
  0x5c   :  { %1069 = vmatprep.subr.bf16.mxu1 %v1164_v3 }
  0x5f   :  { %247 = vperm.xlu1 %1104, %v202_v21  }
  0x63   :  { %374 = vperm.xlu1 %1104, %v333_v22  }
  0x67   :  { %380 = vperm.xlu1 %1104, %v335_v25   ;;  %v164_v25 = vld [vmem:[#allocation4] sm:$0x3] }
  0x96   :  { %v1465_v12 = vpop.permute.xlu1 %208 }
  0x9a   :  { %v212_v20 = vpop.permute.xlu1 %211 }
  0x9b   :  { %vm254_vm3 = vcmp.eq.s32.totalorder %v212_v20, 1 }
  0x9c   :  { %v270_v10 = vsel %vm254_vm3, %v1283_v17, -3.4028235e+38 }
  0x9e   :  { %v215_v21 = vpop.permute.xlu1 %214 }
  0x9f   :  { %vm255_vm12 = vcmp.eq.s32.totalorder %v215_v21, 1 }
  0xa0   :  { %v271_v11 = vsel %vm255_vm12, %v1288_v18, -3.4028235e+38 }
  0xa2   :  { %v218_v22 = vpop.permute.xlu1 %217 }
  0xa3   :  { %vm256_vm14 = vcmp.eq.s32.totalorder %v218_v22, 1 }
  0xa4   :  { %v272_v16 = vsel %vm256_vm14, %v1303_v23, -3.4028235e+38 }
  0xa6   :  { %v221_v30 = vpop.permute.xlu1 %220 }
  0xa7   :  { %v168_v26 = vpop.xlane.xlu0 %167  ;;  %vm257_vm13 = vcmp.eq.s32.totalorder %v221_v30, 1 }
  0xa8   :  { %v169_v27 = vadd.f32 %v168_v26, %v164_v25  ;;  %v273_v13 = vsel %vm257_vm13, %v1308_v24, -3.4028235e+38 }
  0xaa   :  { %171 = vst.msk [vmem:[#allocation4] sm:$0x3] %vm46_vm9, %v169_v27  ;;  %v224_v31 = vpop.permute.xlu1 %223  ;;  %vm253_vm9 = vcmp.eq.s32.totalorder %v1465_v12, 1 }
  0xab   :  { %vm258_vm15 = vcmp.eq.s32.totalorder %v224_v31, 1  ;;  %v269_v8 = vsel %vm253_vm9, %v1277_v15, -3.4028235e+38 }
  0xac   :  { %v274_v12 = vsel %vm258_vm15, %v1322_v28, -3.4028235e+38  ;;  %v285_v22 = vmax.f32 %v269_v8, %v273_v13 }
  0xad   :  { %v286_v26 = vmax.f32 %v270_v10, %v274_v12 }
  0xae   :  { %v227_v33 = vpop.permute.xlu1 %226 }
  0xaf   :  { %v206_v32 = vpop.permute.xlu0 %205  ;;  %vm259_vm4 = vcmp.eq.s32.totalorder %v227_v33, 1 }
  0xb0   :  { %vm252_vm2 = vcmp.eq.s32.totalorder %v206_v32, 1  ;;  %v275_v21 = vsel %vm259_vm4, %v1327_v29, -3.4028235e+38 }
  0xb1   :  { %v446_v36 = vld [vmem:[#allocation4] sm:$0x3]  ;;  %v268_v20 = vsel %vm252_vm2, %v1272_v14, -3.4028235e+38  ;;  %v287_v31 = vmax.f32 %v271_v11, %v275_v21 }
  0xb2   :  { %vm456_vm11 = vcmp.gt.f32.partialorder %v446_v36, 0.0  ;;  %v448_v37 = vmax.f32 %v446_v36, 1.0  ;;  %v1474_v42 = vpop.permute.xlu1 %338  ;;  %v284_v30 = vmax.f32 %v268_v20, %v272_v16 }
  0xb3   :  { %v1471_v38 = vpop.permute.xlu0 %353  ;;  %v458_v41 = vsel %vm456_vm11, 1, %v1162_v1  ;;  %vm385_vm8 = vcmp.eq.s32.totalorder %v1474_v42, 1 }
  0xb4   :  { %460 = vperm.xlu1 %1104, %v458_v41   ;;  %1105 = vrcp.f32 %v448_v37  ;;  %vm390_vm6 = vcmp.eq.s32.totalorder %v1471_v38, 1  ;;  %v401_v36 = vsel %vm385_vm8, %v1272_v14, -3.4028235e+38 }
  0xb5   :  { %v406_v32 = vsel %vm390_vm6, %v1308_v24, -3.4028235e+38 }
  0xb6   :  { %v1478_v49 = vpop.permute.xlu1 %341 }
  0xb7   :  { %v1476_v48 = vpop.permute.xlu0 %359  ;;  %vm386_vm3 = vcmp.eq.s32.totalorder %v1478_v49, 1 }
  0xb8   :  { %vm392_vm11 = vcmp.eq.s32.totalorder %v1476_v48, 1  ;;  %v402_v24 = vsel %vm386_vm3, %v1277_v15, -3.4028235e+38 }
  0xb9   :  { %v408_v38 = vsel %vm392_vm11, %v1327_v29, -3.4028235e+38  ;;  %v418_v58 = vmax.f32 %v402_v24, %v406_v32 }
  0xba   :  { %v1481_v1 = vpop.permute.xlu1 %344 }
  0xbb   :  { %v233_v55 = vpop.permute.xlu0 %232 }
  0xbc   :  { %vm261_vm5 = vcmp.eq.s32.totalorder %v233_v55, 1 }
  0xbd   :  { %v277_v27 = vsel %vm261_vm5, %v1348_v35, -3.4028235e+38 }
  0xbe   :  { %v1106_v59 = vpop.eup %1105  ;;  %v348_v61 = vpop.permute.xlu1 %347  ;;  %v289_v41 = vmax.f32 %v285_v22, %v277_v27 }
  0xbf   :  { %v239_v60 = vpop.permute.xlu0 %238  ;;  %452 = vperm.xlu0 %1103, %v1106_v59   ;;  %vm388_vm13 = vcmp.eq.s32.totalorder %v348_v61, 1 }
  0xc0   :  { %vm263_vm10 = vcmp.eq.s32.totalorder %v239_v60, 1  ;;  %v404_v52 = vsel %vm388_vm13, %v1288_v18, -3.4028235e+38 }
  0xc1   :  { %v279_v37 = vsel %vm263_vm10, %v1365_v40, -3.4028235e+38  ;;  %vm387_vm10 = vcmp.eq.s32.totalorder %v1481_v1, 1  ;;  %v420_v18 = vmax.f32 %v404_v52, %v408_v38 }
  0xc2   :  { %v351_v63 = vpop.permute.xlu1 %350  ;;  %v291_v14 = vmax.f32 %v287_v31, %v279_v37 }
  0xc3   :  { %v1484_v62 = vpop.permute.xlu0 %365  ;;  %vm389_vm14 = vcmp.eq.s32.totalorder %v351_v63, 1 }
  0xc4   :  { %vm394_vm4 = vcmp.eq.s32.totalorder %v1484_v62, 1  ;;  %v405_v54 = vsel %vm389_vm14, %v1303_v23, -3.4028235e+38  ;;  %vm439_vm14 = vcmask 1040384  }
  0xc5   :  { %v410_v23 = vsel %vm394_vm4, %v1348_v35, -3.4028235e+38  ;;  %v403_v35 = vsel %vm387_vm10, %v1283_v17, -3.4028235e+38 }
  0xc6   :  { %v1486_v0 = vpop.permute.xlu1 %356 }
  0xc7   :  { %v1488_v4 = vpop.permute.xlu0 %371  ;;  %vm391_vm6 = vcmp.eq.s32.totalorder %v1486_v0, 1  ;;  %v422_v0 = vmax.f32 %v418_v58, %v410_v23 }
  0xc8   :  { %vm396_vm5 = vcmp.eq.s32.totalorder %v1488_v4, 1 }
  0xca   :  { %v230_v5 = vpop.permute.xlu1 %229 }
  0xcb   :  { %v245_v6 = vpop.permute.xlu0 %244  ;;  %vm260_vm7 = vcmp.eq.s32.totalorder %v230_v5, 1  ;;  %v417_v5 = vmax.f32 %v401_v36, %v405_v54  ;;  %v639_v54 = vld [vmem:[#allocation5 + $0x118] sm:$0xff] }
  0xcc   :  { %vm265_vm9 = vcmp.eq.s32.totalorder %v245_v6, 1  ;;  %v276_v33 = vsel %vm260_vm7, %v1343_v34, -3.4028235e+38  ;;  %v412_v6 = vsel %vm396_vm5, %v1365_v40, -3.4028235e+38 }
  0xcd   :  { %v281_v42 = vsel %vm265_vm9, %v1380_v45, -3.4028235e+38  ;;  %v288_v47 = vmax.f32 %v284_v30, %v276_v33 }
  0xce   :  { %v236_v7 = vpop.permute.xlu1 %235  ;;  %v293_v29 = vmax.f32 %v289_v41, %v281_v42  ;;  %v438_v42 = vld [vmem:[#allocation3] sm:$0x3] }
  0xcf   :  { %v251_v19 = vpop.permute.xlu0 %250  ;;  %vm262_vm12 = vcmp.eq.s32.totalorder %v236_v7, 1  ;;  %v407_v7 = vsel %vm391_vm6, %v1322_v28, -3.4028235e+38  ;;  %v424_v28 = vmax.f32 %v420_v18, %v412_v6  ;;  %v642_v18 = vld [vmem:[#allocation5 + $0x130] sm:$0xff]  ;;  %v645_v6 = vld [vmem:[#allocation5 + $0x148] sm:$0xff] }
  0xd0   :  { %vm267_vm15 = vcmp.eq.s32.totalorder %v251_v19, 1  ;;  %v278_v48 = vsel %vm262_vm12, %v1360_v39, -3.4028235e+38  ;;  %v419_v40 = vmax.f32 %v403_v35, %v407_v7  ;;  %v646_v7 = vld [vmem:[#allocation5 + $0x150] sm:$0xff]  ;;  %v649_v35 = vld [vmem:[#allocation5 + $0x168] sm:$0xff] }
  0xd1   :  { %v283_v55 = vsel %vm267_vm15, %v1399_v51, -3.4028235e+38  ;;  %v290_v56 = vmax.f32 %v286_v26, %v278_v48  ;;  %v636_v48 = vld [vmem:[#allocation5 + $0x100] sm:$0xff] }
  0xd2   :  { %v1492_v9 = vpop.permute.xlu1 %362  ;;  %v295_v61 = vmax.f32 %v291_v14, %v283_v55 }
  0xd3   :  { %v378_v43 = vpop.permute.xlu0 %377  ;;  %vm393_vm7 = vcmp.eq.s32.totalorder %v1492_v9, 1 }
  0xd4   :  { %v409_v8 = vsel %vm393_vm7, %v1343_v34, -3.4028235e+38  ;;  %vm398_vm9 = vcmp.eq.s32.totalorder %v378_v43, 1 }
  0xd5   :  { %v421_v11 = vmax.f32 %v417_v5, %v409_v8  ;;  %v414_v34 = vsel %vm398_vm9, %v1380_v45, -3.4028235e+38  ;;  %v644_v5 = vld [vmem:[#allocation5 + $0x140] sm:$0xff]  ;;  %v647_v8 = vld [vmem:[#allocation5 + $0x158] sm:$0xff] }
  0xd6   :  { %v369_v25 = vpop.permute.xlu1 %368  ;;  %v426_v1 = vmax.f32 %v422_v0, %v414_v34 }
  0xd7   :  { %v384_v59 = vpop.permute.xlu0 %383  ;;  %vm395_vm11 = vcmp.eq.s32.totalorder %v369_v25, 1 }
  0xd8   :  { %vm400_vm3 = vcmp.eq.s32.totalorder %v384_v59, 1  ;;  %v411_v62 = vsel %vm395_vm11, %v1360_v39, -3.4028235e+38  ;;  %v643_v59 = vld [vmem:[#allocation5 + $0x138] sm:$0xff] }
  0xd9   :  { %v416_v16 = vsel %vm400_vm3, %v1399_v51, -3.4028235e+38  ;;  %v423_v19 = vmax.f32 %v419_v40, %v411_v62  ;;  %v651_v40 = vld [vmem:[#allocation5 + $0x178] sm:$0xff] }
  0xda   :  { %v242_v46 = vpop.permute.xlu1 %241  ;;  %v428_v39 = vmax.f32 %v424_v28, %v416_v16 }
  0xdb   :  { %vm264_vm2 = vcmp.eq.s32.totalorder %v242_v46, 1  ;;  %v91_v46 = vld [vmem:[#allocation2] sm:$0x3] }
  0xdc   :  { %v280_v49 = vsel %vm264_vm2, %v1375_v44, -3.4028235e+38 }
  0xdd   :  { %v292_v53 = vmax.f32 %v288_v47, %v280_v49  ;;  %v637_v49 = vld [vmem:[#allocation5 + $0x108] sm:$0xff] }
  0xde   :  { %v248_v15 = vpop.permute.xlu1 %247  ;;  %v1070_v52 = vpack.c.bf16 %v637_v49, %v636_v48 }
  0xdf   :  { %v296_v57 = vmax.f32 %v292_v53, %v293_v29  ;;  %vm266_vm8 = vcmp.eq.s32.totalorder %v248_v15, 1  ;;  %v638_v53 = vld [vmem:[#allocation5 + $0x110] sm:$0xff] }
  0xe0   :  { %v282_v60 = vsel %vm266_vm8, %v1394_v50, -3.4028235e+38  ;;  %v1073_v15 = vpack.c.bf16 %v639_v54, %v638_v53 }
  0xe1   :  { %v294_v63 = vmax.f32 %v290_v56, %v282_v60  ;;  %v640_v56 = vld [vmem:[#allocation5 + $0x120] sm:$0xff] }
  0xe2   :  { %v375_v9 = vpop.permute.xlu1 %374 }
  0xe3   :  { %v297_v10 = vmax.f32 %v294_v63, %v295_v61  ;;  %vm397_vm12 = vcmp.eq.s32.totalorder %v375_v9, 1  ;;  %v1079_v61 = vpack.c.bf16 %v643_v59, %v642_v18  ;;  %v1085_v9 = vpack.c.bf16 %v647_v8, %v646_v7 }
  0xe4   :  { %v413_v4 = vsel %vm397_vm12, %v1375_v44, -3.4028235e+38 }
  0xe5   :  { %v298_v13 = vmax.f32 %v296_v57, %v297_v10  ;;  %v425_v21 = vmax.f32 %v421_v11, %v413_v4  ;;  %v641_v57 = vld [vmem:[#allocation5 + $0x128] sm:$0xff]  ;;  %v648_v10 = vld [vmem:[#allocation5 + $0x160] sm:$0xff]  ;;  %v650_v4 = vld [vmem:[#allocation5 + $0x170] sm:$0xff] }
  0xe6   :  { %v381_v12 = vpop.permute.xlu1 %380  ;;  %v1076_v58 = vpack.c.bf16 %v641_v57, %v640_v56  ;;  %v1088_v62 = vpack.c.bf16 %v649_v35, %v648_v10  ;;  %v1091_v11 = vpack.c.bf16 %v651_v40, %v650_v4 }
  0xe7   :  { %v299_v20 = vrot.slane %v298_v13, 4  ;;  %vm399_vm13 = vcmp.eq.s32.totalorder %v381_v12, 1  ;;  %v429_v25 = vmax.f32 %v425_v21, %v426_v1 }
  0xe8   :  { %v415_v17 = vsel %vm399_vm13, %v1394_v50, -3.4028235e+38 }
  0xe9   :  { %v300_v22 = vmax.f32 %v298_v13, %v299_v20  ;;  %v427_v44 = vmax.f32 %v423_v19, %v415_v17  ;;  %v786_v19 = vld [vmem:[%s1578_s4] ss:$0 sm:$0xff] }
  0xeb   :  { %v430_v26 = vmax.f32 %v427_v44, %v428_v39  ;;  %v301_v27 = vrot.slane %v300_v22, 2 }
  0xed   :  { %v431_v30 = vmax.f32 %v429_v25, %v430_v26  ;;  %v302_v32 = vmax.f32 %v300_v22, %v301_v27 }
  0xef   :  { %v432_v31 = vrot.slane %v431_v30, 4  ;;  %v303_v51 = vrot.slane %v302_v32, 1 }
  0xf1   :  { %v433_v45 = vmax.f32 %v431_v30, %v432_v31  ;;  %v304_v38 = vmax.f32 %v302_v32, %v303_v51  ;;  %v787_v32 = vld [vmem:[%s1579_s5] ss:$0 sm:$0xff] }
  0xf3   :  { %v434_v33 = vrot.slane %v433_v45, 2 }
  0xf5   :  { %v435_v36 = vmax.f32 %v433_v45, %v434_v33  ;;  %v788_v33 = vld [vmem:[%s1580_s6] ss:$0 sm:$0xff] }
  0xf7   :  { %v436_v37 = vrot.slane %v435_v36, 1 }
  0xf9   :  { %v437_v41 = vmax.f32 %v435_v36, %v436_v37 }
  0xfb   :  { %v440_v50 = vsel %vm439_vm14, %v304_v38, %v437_v41 }
  0xfc   :  { %v441_v43 = vmax.f32 %v438_v42, %v440_v50 }
  0xfe   :  { %442 = vst [vmem:[#allocation3] sm:$0x3] %v441_v43 }
 0x105   :  { %v457_v55 = vld [vmem:[#allocation3] sm:$0x3] }
 0x10c   :  { %v158_v47 = vpop.f32.mrb[0].mxu0 }
 0x10d   :  { %v162_v24 = vadd.f32 %v158_v47, %v91_v46  ;;  %v891_v14 = vpop.f32.mrb[1].mxu0 }
 0x10f   :  { %163 = vst [vmem:[#allocation2] sm:$0x3] %v162_v24 }
 0x116   :  { %v447_v60 = vld [vmem:[#allocation2] sm:$0x3] }
 0x133   :  { %v461_v29 = vpop.permute.xlu1 %460 }
 0x134   :  { %vm462_vm15 = vcmp.eq.s32.totalorder %v461_v29, 1 }
 0x135   :  { %925 = vmatmul.mubr.msk.f32.vlgmr.msra.gmra.mrb[0].mxu1 %vm462_vm15, %v457_v55 }
 0x136   :  { %1071 = vmatpush3.bf16.msra.mxu1 %v1070_v52  ;;  %994 = vmatprep.mubr.msk.f32.mxu1 %vm1165_vm0, %v1163_v2  ;;  %v1082_v2 = vpack.c.bf16 %v645_v6, %v644_v5 }
 0x137   :  { %1072 = vmatprep.subr.bf16.mxu1 %v1164_v3 }
 0x13a   :  { %1074 = vmatpush3.bf16.msra.mxu1 %v1073_v15 }
 0x13b   :  { %1075 = vmatprep.subr.bf16.mxu1 %v1164_v3 }
 0x13e   :  { %1077 = vmatpush3.bf16.msra.mxu1 %v1076_v58  ;;  %v453_v23 = vpop.permute.xlu0 %452 }
 0x13f   :  { %v455_v63 = vmul.f32 %v453_v23, %v447_v60  ;;  %1078 = vmatprep.subr.bf16.mxu1 %v1164_v3 }
 0x141   :  { %960 = vmatmul.mubr.f32.vlgmr.msra.gmra.mrb[2].mxu0 %v455_v63 }
 0x142   :  { %1080 = vmatpush3.bf16.msra.mxu1 %v1079_v61 }
 0x143   :  { %1081 = vmatprep.subr.bf16.mxu1 %v1164_v3 }
 0x146   :  { %1083 = vmatpush3.bf16.msra.mxu1 %v1082_v2 }
 0x147   :  { %1084 = vmatprep.subr.bf16.mxu1 %v1164_v3 }
 0x14a   :  { %1086 = vmatpush3.bf16.msra.mxu1 %v1085_v9 }
 0x14b   :  { %1087 = vmatprep.subr.bf16.mxu1 %v1164_v3 }
 0x14e   :  { %1089 = vmatpush3.bf16.msra.mxu1 %v1088_v62 }
 0x14f   :  { %1090 = vmatprep.subr.bf16.mxu1 %v1164_v3 }
 0x152   :  { %1092 = vmatpush3.bf16.msra.mxu1 %v1091_v11 }
 0x155   :  { %995 = vmatmul.mubr.f32.vlgmr.msra.gmra.mrb[2].mxu1 %v447_v60 }
 0x208   :  { %v562_v13 = vpop.f32.mrb[0].mxu1 }
 0x209   :  { %v926_v0 = vpop.f32.mrb[1].mxu1 }
 0x214   :  { %v632_v28 = vpop.f32.mrb[2].mxu0 }
 0x215   :  { %v633_v34 = vadd.f32 %v632_v28, %v562_v13  ;;  %v961_v16 = vpop.f32.mrb[3].mxu0 }
 0x228   :  { %v718_v12 = vpop.f32.mrb[2].mxu1 }
 0x229   :  { %v722_v20 = vadd.f32 %v718_v12, %v633_v34  ;;  %v996_v21 = vpop.f32.mrb[3].mxu1 }
 0x22b   :  { %v730_v17 = vadd.f32 %v786_v19, %v722_v20 }
 0x22d   :  { %v731_v1 = vsel %vm165_vm1, %v730_v17, 0.0 }
 0x22e   :  { %732 = vadd.xlane.f32.xlu1 %v731_v1 }
 0x2bb   :  { %v733_v39 = vpop.xlane.xlu1 %732 }
 0x2bc   :  { %v735_v3 = vmul.f32 0.0078125, %v733_v39 }
 0x2be   :  { %v736_v22 = vsub.f32 %v730_v17, %v735_v3 }
 0x2c0   :  { %v737_v44 = vmul.f32 %v736_v22, %v736_v22 }
 0x2c2   :  { %v738_v25 = vsel %vm165_vm1, %v737_v44, 0.0 }
 0x2c3   :  { %739 = vadd.xlane.f32.xlu0 %v738_v25 }
 0x350   :  { %v740_v26 = vpop.xlane.xlu0 %739 }
 0x351   :  { %v741_v27 = vmul.f32 0.0078125, %v740_v26 }
 0x353   :  { %v742_v30 = vadd.f32 1e-05, %v741_v27 }
 0x355   :  { %1107 = vrsqrt.f32 %v742_v30 }
 0x35f   :  { %v1108_v31 = vpop.eup %1107 }
 0x360   :  { %v744_v45 = vmul.f32 %v1108_v31, %v736_v22 }
 0x362   :  { %v752_v51 = vmul.f32 %v787_v32, %v744_v45 }
 0x364   :  { %v760_v36 = vadd.f32 %v788_v33, %v752_v51 }
 0x366   :  { %v762_v37 = vmul.f32 0.70710677, %v760_v36  ;;  %v761_v41 = vmul.f32 0.5, %v760_v36 }
 0x368   :  { %1109 = verf.f32 %v762_v37 }
 0x372   :  { %v1110_v38 = vpop.eup %1109 }
 0x373   :  { %v764_v42 = vadd.f32 1.0, %v1110_v38 }
 0x375   :  { %v765_v50 = vmul.f32 %v764_v42, %v761_v41 }
 0x377   :  { %766 = vst [vmem:[#allocation8] sm:$0x3] %v765_v50 }
 0x378   :  { %1144 = shalt.err (!%p1141_p12)
}
 0x379   :  { %s1145_s12 = scalar_lea.hbm %s1581_s7, 32 }
 0x37a   :  { %p1146_p13 = scmp.ne.s32.totalorder %s1581_s7, %s1145_s12  ;;  %p1149_p0 = scmp.lt.u32.totalorder %s1145_s12, %s1581_s7 }
 0x37c   :  { %p1151_p1 = pnand %p1149_p0, %p1146_p13 }
 0x37e   :  { %1154 = shalt.err (!%p1151_p1)
}
 0x37f   :  { %776 = dma.vmem_to_hbm [thread:$0]  %s774_s10, 32, %s1581_s7, [#allocation7]  }
 0x380   :  { %1157 = dma.done.wait [#allocation7], 32  }
 0x381   :  { %1158 = vsyncadd [#allocation7], 4294967264 }
 0x382   :  { %780 = vsyncpa [#allocation6], 1 }
 0x383   :  { %781 = vsyncpa [#allocation7], 1 }

</bundles_post_ra>
